<compile_context>
chip_gen: v6e
topology: v6e:2x2x1
jax: 0.10.0
libtpu: 0.0.40
codegen_flags: <defaults>
</compile_context>

<pallas_src>
import numpy as np
import jax
import jax.numpy as jnp
from jax.experimental import pallas as pl
from jax.experimental.pallas import tpu as pltpu


def firwin_lowpass(numtaps: int, cutoff: float) -> np.ndarray:
    """Deterministic re-implementation of scipy.signal.firwin defaults
    (lowpass, symmetric Hamming window, scaled so the DC gain is 1).  Taps are
    explicitly symmetrized so the kernel may pair x[t+k] with x[t+K-1-k]."""
    m = np.arange(numtaps, dtype=np.float64) - (numtaps - 1) / 2.0
    h = cutoff * np.sinc(cutoff * m)
    h = h * np.hamming(numtaps)
    h = 0.5 * (h + h[::-1])          # exact linear-phase symmetry (<= 1 ulp)
    h = h / np.sum(h)
    return h.astype(np.float32)


def _cdiv(a: int, b: int) -> int:
    return -(-a // b)


def _round_up(x: int, m: int) -> int:
    return _cdiv(x, m) * m


def _power_vals(x, power):
    """torch.abs(x ** power); abs() elided for even integer powers."""
    if power == 2:
        return x * x
    if isinstance(power, int) and power % 2 == 0:
        return x ** power
    return jnp.abs(x ** power)


def _choose_seg_len(B: int, T_out: int) -> int:
    """Lane width of each folded row: a multiple of 128, capped at 1024 (keeps
    the 128-lane halo overhead <= 12.5%), shrunk for small batch so that the
    folded row count B*ceil(T_out/seg_len) reaches >= 8 (full f32 sublane
    occupancy)."""
    cap = min(1024, _round_up(T_out, 128))
    if B >= 8:
        return cap
    target = (T_out * B) // 8
    seg = max(128, (target // 128) * 128)
    return min(seg, cap)


def _frame(x, T, S, seg_len, halo, total_rows):
    """(B, T) f32 -> (total_rows, seg_len + halo) overlapped frames.

    Row b*S + s holds x[b, s*seg_len : s*seg_len + seg_len + halo], zero padded
    past T; rows >= B*S are all-zero.  XLA fuses the pad/slice/concat/reshape
    chain into a single framing pass per input when jitted."""
    B = x.shape[0]
    P = S * seg_len + halo
    xp = jnp.pad(x, ((0, 0), (0, P - T)))
    main = xp[:, :S * seg_len].reshape(B, S, seg_len)
    halo_src = jnp.pad(xp[:, seg_len:], ((0, 0), (0, seg_len - halo)))
    halo_blk = halo_src.reshape(B, S, seg_len)[:, :, :halo]
    frames = jnp.concatenate([main, halo_blk], axis=2)
    frames = frames.reshape(B * S, seg_len + halo)
    if total_rows > B * S:
        frames = jnp.pad(frames, ((0, total_rows - B * S), (0, 0)))
    return frames


def _make_kernel(taps, rows, win, seg_len, power, n_valid_rows, mask_last):
    K = len(taps)
    half = K // 2

    def _shift(x, k):
        # x[:, t] -> x[:, t + k].  XLU lane rotate; no wraparound reaches the
        # first seg_len lanes because the 128-lane halo holds the K-1 history.
        return x if k == 0 else pltpu.roll(x, win - k, axis=1)

    def _partial(vals, i=None):
        # (rows, seg_len) -> (1, 8, 128) partial sum using only aligned
        # 128-lane / 8-sublane slices (pure VALU adds; no cross-lane reduce).
        p = vals[:, 0:128]
        for j in range(1, seg_len // 128):
            p = p + vals[:, j * 128:(j + 1) * 128]
        if i is not None:
            # Last row tile may be partial: drop rows beyond the frame array.
            row = jax.lax.broadcasted_iota(jnp.int32, (rows, 128), 0) + i * rows
            p = jnp.where(row < n_valid_rows, p, 0.0)
        q = p[0:8, :]
        for r in range(1, rows // 8):
            q = q + p[r * 8:(r + 1) * 8, :]
        return q.reshape(1, 8, 128)

    def kernel(yt_ref, yp_ref, lp_ref, psum_ref):
        # Fused diff on the whole (rows, seg_len + halo) window (VPU).
        diff = yt_ref[...] - yp_ref[...]

        # FIR (cross-correlation == torch.nn.functional.conv1d) with the
        # symmetric taps paired before the multiply.
        acc = None
        for k in range(half):
            term = (_shift(diff, k) + _shift(diff, K - 1 - k)) * taps[k]
            acc = term if acc is None else acc + term
        if K % 2 == 1:
            term = _shift(diff, half) * taps[half]
            acc = term if acc is None else acc + term

        lp = acc[:, :seg_len]            # aligned lane slice, drops the halo
        lp_ref[...] = lp                 # lane-dense store

        vals = _power_vals(lp, power)

        if mask_last:
            i = pl.program_id(0)
            last = pl.num_programs(0) - 1

            @pl.when(i != last)
            def _():
                psum_ref[...] = _partial(vals)

            @pl.when(i == last)
            def _():
                psum_ref[...] = _partial(vals, i)
        else:
            psum_ref[...] = _partial(vals)

    return kernel


def td_lowpass(y_true, y_pred, *, numtaps=15, cutoff=0.25, power=2,
               seg_len=None, max_tile_rows=128):
    """Pallas TPU port of TDLowpass.forward.

    y_true, y_pred: (B, 1, T).  Returns (loss, diff_lp) with diff_lp of shape
    (B, 1, T - numtaps + 1), matching the PyTorch module."""
    assert y_true.ndim == 3 and y_pred.ndim == 3
    B, C, T = y_true.shape
    assert y_pred.shape == (B, C, T)
    assert C == 1, "TDLowpass uses a single-channel FIR filter"
    K = int(numtaps)
    assert 1 <= K <= 129, "the 128-lane halo must cover the K-1 FIR history"
    assert T >= K
    T_out = T - K + 1

    # FIR taps baked into the kernel as Python float immediates (splats).
    taps = tuple(float(t) for t in firwin_lowpass(K, float(cutoff)))

    HALO = 128
    if seg_len is None:
        seg_len = _choose_seg_len(B, T_out)
    assert seg_len % 128 == 0 and seg_len >= HALO
    assert max_tile_rows % 8 == 0 and max_tile_rows >= 8
    WIN = seg_len + HALO

    S = _cdiv(T_out, seg_len)          # folded segments per batch item
    R = B * S                          # real rows
    R8 = max(8, _round_up(R, 8))       # rows incl. all-zero padding rows
    ROWS = min(R8, max_tile_rows)      # rows per grid step (multiple of 8)
    num_tiles = _cdiv(R8, ROWS)
    mask_last = (R8 % ROWS) != 0       # partial last input block -> mask rows

    yt = _frame(y_true.reshape(B, T).astype(jnp.float32), T, S, seg_len, HALO, R8)
    yp = _frame(y_pred.reshape(B, T).astype(jnp.float32), T, S, seg_len, HALO, R8)

    lp_rows, partials = pl.pallas_call(
        _make_kernel(taps, ROWS, WIN, seg_len, power, R8, mask_last),
        out_shape=(
            jax.ShapeDtypeStruct((R8, seg_len), jnp.float32),
            jax.ShapeDtypeStruct((num_tiles, 8, 128), jnp.float32),
        ),
        grid_spec=pltpu.PrefetchScalarGridSpec(
            num_scalar_prefetch=0,
            grid=(num_tiles,),
            in_specs=[pl.BlockSpec((ROWS, WIN), lambda i: (i, 0)),
                      pl.BlockSpec((ROWS, WIN), lambda i: (i, 0))],
            out_specs=[pl.BlockSpec((ROWS, seg_len), lambda i: (i, 0)),
                       pl.BlockSpec((1, 8, 128), lambda i: (i, 0, 0))],
        ),
        compiler_params=pltpu.CompilerParams(
            # Every grid step is independent (per-tile partial sums), so the
            # row-tile axis shards across both TensorCores on v7x.
            dimension_semantics=("parallel",)),
    )(yt, yp)

    # Un-fold: (R, seg_len) rows -> (B, S*seg_len), then crop to T_out.
    lp_flat = lp_rows[:R].reshape(B, S * seg_len)
    diff_lp = lp_flat[:, :T_out].reshape(B, 1, T_out)

    # Loss: kernel partial sums cover every column of every valid row;
    # subtract the padded-tail contribution (tiny slice) and normalize.
    total = jnp.sum(partials, dtype=jnp.float32)
    if S * seg_len > T_out:
        total = total - jnp.sum(_power_vals(lp_flat[:, T_out:], power),
                                dtype=jnp.float32)
    loss = total / jnp.float32(B * T_out)
    return loss, diff_lp


def _reference(y_true, y_pred, numtaps, cutoff, power):
    """Plain-JAX reference: torch conv1d == cross-correlation, VALID padding."""
    w = jnp.asarray(firwin_lowpass(numtaps, float(cutoff)))
    diff = (y_true - y_pred).astype(jnp.float32)
    lp = jax.lax.conv_general_dilated(
        diff, w.reshape(1, 1, numtaps), window_strides=(1,), padding="VALID",
        dimension_numbers=("NCH", "OIH", "NCH"))
    loss = jnp.mean(jnp.abs(lp ** power))
    return loss, lp


if __name__ == "__main__":
    numtaps, cutoff = 15, 0.25
    jitted = jax.jit(td_lowpass,
                     static_argnames=("numtaps", "cutoff", "power",
                                      "seg_len", "max_tile_rows"))

    def check(B, T, power, k1, k2, **kw):
        y_true = jax.random.normal(k1, (B, 1, T), dtype=jnp.float32)
        y_pred = jax.random.normal(k2, (B, 1, T), dtype=jnp.float32)
        loss, diff_lp = jitted(y_true, y_pred, numtaps=numtaps, cutoff=cutoff,
                               power=power, **kw)
        jax.block_until_ready((loss, diff_lp))
        ref_loss, ref_lp = _reference(y_true, y_pred, numtaps, cutoff, power)
        assert diff_lp.shape == ref_lp.shape, (diff_lp.shape, ref_lp.shape)
        assert jnp.allclose(diff_lp, ref_lp, atol=1e-5, rtol=1e-4), \
            float(jnp.max(jnp.abs(diff_lp - ref_lp)))
        assert jnp.allclose(loss, ref_loss, atol=1e-6, rtol=1e-4), \
            (float(loss), float(ref_loss))

    keys = jax.random.split(jax.random.PRNGKey(0), 6)
    # Small default case: B=2, T=1500 -> folded into 12 rows of 256+128 lanes,
    # one grid step.
    check(2, 1500, 2, keys[0], keys[1])
    # Multi-tile grid + partial last row block (exercises the masked path):
    # T_out=8986, seg_len=128 -> 144 rows, 32-row tiles -> 5 grid steps.
    check(2, 9000, 2, keys[2], keys[3], seg_len=128, max_tile_rows=32)
    # Odd power exercises the abs() path of |diff_lp ** p|.
    check(2, 1500, 1, keys[4], keys[5])
    print("KERNEL_OK")
</pallas_src>

<mosaic_0001>
module attributes {stable_mosaic.version = 11 : i64} {
  func.func @kernel(%arg0: i32, %arg1: memref<16x384xf32, #tpu.memory_space<vmem>>, %arg2: memref<16x384xf32, #tpu.memory_space<vmem>>, %arg3: memref<16x256xf32, #tpu.memory_space<vmem>>, %arg4: memref<1x8x128xf32, #tpu.memory_space<vmem>>) attributes {dimension_semantics = [#tpu.dimension_semantics<parallel>], iteration_bounds = array<i64: 1>, scalar_prefetch = 0 : i64, scratch_operands = 0 : i64, tpu.core_type = #tpu.core_type<tc>, window_params = [{transform_indices = @transform_0, window_bounds = array<i64: 16, 384>}, {transform_indices = @transform_1, window_bounds = array<i64: 16, 384>}, {transform_indices = @transform_2, window_bounds = array<i64: 16, 256>}, {transform_indices = @transform_3, window_bounds = array<i64: 1, 8, 128>}]} {
    %c0 = arith.constant 0 : index
    %c0_0 = arith.constant 0 : index
    %0 = vector.load %arg1[%c0, %c0_0] : memref<16x384xf32, #tpu.memory_space<vmem>>, vector<16x384xf32>
    %c0_1 = arith.constant 0 : index
    %c0_2 = arith.constant 0 : index
    %1 = vector.load %arg2[%c0_1, %c0_2] : memref<16x384xf32, #tpu.memory_space<vmem>>, vector<16x384xf32>
    %2 = arith.subf %0, %1 : vector<16x384xf32>
    %c370_i32 = arith.constant 370 : i32
    %3 = tpu.dynamic_rotate %2 by %c370_i32 dim 1 : vector<16x384xf32>, i32 -> vector<16x384xf32>
    %4 = arith.addf %2, %3 : vector<16x384xf32>
    %cst = arith.constant -0.00257759658 : f32
    %5 = vector.broadcast %cst : f32 to vector<16x384xf32>
    %6 = arith.mulf %4, %5 : vector<16x384xf32>
    %c383_i32 = arith.constant 383 : i32
    %7 = tpu.dynamic_rotate %2 by %c383_i32 dim 1 : vector<16x384xf32>, i32 -> vector<16x384xf32>
    %c371_i32 = arith.constant 371 : i32
    %8 = tpu.dynamic_rotate %2 by %c371_i32 dim 1 : vector<16x384xf32>, i32 -> vector<16x384xf32>
    %9 = arith.addf %7, %8 : vector<16x384xf32>
    %cst_3 = arith.constant -0.00667449506 : f32
    %10 = vector.broadcast %cst_3 : f32 to vector<16x384xf32>
    %11 = arith.mulf %9, %10 : vector<16x384xf32>
    %12 = arith.addf %6, %11 : vector<16x384xf32>
    %c382_i32 = arith.constant 382 : i32
    %13 = tpu.dynamic_rotate %2 by %c382_i32 dim 1 : vector<16x384xf32>, i32 -> vector<16x384xf32>
    %c372_i32 = arith.constant 372 : i32
    %14 = tpu.dynamic_rotate %2 by %c372_i32 dim 1 : vector<16x384xf32>, i32 -> vector<16x384xf32>
    %15 = arith.addf %13, %14 : vector<16x384xf32>
    %cst_4 = arith.constant -0.0114210909 : f32
    %16 = vector.broadcast %cst_4 : f32 to vector<16x384xf32>
    %17 = arith.mulf %15, %16 : vector<16x384xf32>
    %18 = arith.addf %12, %17 : vector<16x384xf32>
    %c381_i32 = arith.constant 381 : i32
    %19 = tpu.dynamic_rotate %2 by %c381_i32 dim 1 : vector<16x384xf32>, i32 -> vector<16x384xf32>
    %c373_i32 = arith.constant 373 : i32
    %20 = tpu.dynamic_rotate %2 by %c373_i32 dim 1 : vector<16x384xf32>, i32 -> vector<16x384xf32>
    %21 = arith.addf %19, %20 : vector<16x384xf32>
    %cst_5 = arith.constant 4.27372169E-18 : f32
    %22 = vector.broadcast %cst_5 : f32 to vector<16x384xf32>
    %23 = arith.mulf %21, %22 : vector<16x384xf32>
    %24 = arith.addf %18, %23 : vector<16x384xf32>
    %c380_i32 = arith.constant 380 : i32
    %25 = tpu.dynamic_rotate %2 by %c380_i32 dim 1 : vector<16x384xf32>, i32 -> vector<16x384xf32>
    %c374_i32 = arith.constant 374 : i32
    %26 = tpu.dynamic_rotate %2 by %c374_i32 dim 1 : vector<16x384xf32>, i32 -> vector<16x384xf32>
    %27 = arith.addf %25, %26 : vector<16x384xf32>
    %cst_6 = arith.constant 0.0482925326 : f32
    %28 = vector.broadcast %cst_6 : f32 to vector<16x384xf32>
    %29 = arith.mulf %27, %28 : vector<16x384xf32>
    %30 = arith.addf %24, %29 : vector<16x384xf32>
    %c379_i32 = arith.constant 379 : i32
    %31 = tpu.dynamic_rotate %2 by %c379_i32 dim 1 : vector<16x384xf32>, i32 -> vector<16x384xf32>
    %c375_i32 = arith.constant 375 : i32
    %32 = tpu.dynamic_rotate %2 by %c375_i32 dim 1 : vector<16x384xf32>, i32 -> vector<16x384xf32>
    %33 = arith.addf %31, %32 : vector<16x384xf32>
    %cst_7 = arith.constant 0.131859452 : f32
    %34 = vector.broadcast %cst_7 : f32 to vector<16x384xf32>
    %35 = arith.mulf %33, %34 : vector<16x384xf32>
    %36 = arith.addf %30, %35 : vector<16x384xf32>
    %c378_i32 = arith.constant 378 : i32
    %37 = tpu.dynamic_rotate %2 by %c378_i32 dim 1 : vector<16x384xf32>, i32 -> vector<16x384xf32>
    %c376_i32 = arith.constant 376 : i32
    %38 = tpu.dynamic_rotate %2 by %c376_i32 dim 1 : vector<16x384xf32>, i32 -> vector<16x384xf32>
    %39 = arith.addf %37, %38 : vector<16x384xf32>
    %cst_8 = arith.constant 0.215265393 : f32
    %40 = vector.broadcast %cst_8 : f32 to vector<16x384xf32>
    %41 = arith.mulf %39, %40 : vector<16x384xf32>
    %42 = arith.addf %36, %41 : vector<16x384xf32>
    %c377_i32 = arith.constant 377 : i32
    %43 = tpu.dynamic_rotate %2 by %c377_i32 dim 1 : vector<16x384xf32>, i32 -> vector<16x384xf32>
    %cst_9 = arith.constant 0.250511616 : f32
    %44 = vector.broadcast %cst_9 : f32 to vector<16x384xf32>
    %45 = arith.mulf %43, %44 : vector<16x384xf32>
    %46 = arith.addf %42, %45 : vector<16x384xf32>
    %47 = vector.extract_strided_slice %46 {offsets = [0, 0], sizes = [16, 256], strides = [1, 1]} : vector<16x384xf32> to vector<16x256xf32>
    %c0_10 = arith.constant 0 : index
    %c0_11 = arith.constant 0 : index
    %48 = vector.load %arg3[%c0_10, %c0_11] : memref<16x256xf32, #tpu.memory_space<vmem>>, vector<16x256xf32>
    tpu.vector_store %arg3[%c0_10, %c0_11], %47 {strides = array<i32>} : memref<16x256xf32, #tpu.memory_space<vmem>>, vector<16x256xf32>,
    %49 = arith.mulf %47, %47 : vector<16x256xf32>
    %50 = vector.extract_strided_slice %49 {offsets = [0, 0], sizes = [16, 128], strides = [1, 1]} : vector<16x256xf32> to vector<16x128xf32>
    %51 = vector.extract_strided_slice %49 {offsets = [0, 128], sizes = [16, 128], strides = [1, 1]} : vector<16x256xf32> to vector<16x128xf32>
    %52 = arith.addf %50, %51 : vector<16x128xf32>
    %53 = vector.extract_strided_slice %52 {offsets = [0, 0], sizes = [8, 128], strides = [1, 1]} : vector<16x128xf32> to vector<8x128xf32>
    %54 = vector.extract_strided_slice %52 {offsets = [8, 0], sizes = [8, 128], strides = [1, 1]} : vector<16x128xf32> to vector<8x128xf32>
    %55 = arith.addf %53, %54 : vector<8x128xf32>
    %56 = vector.shape_cast %55 : vector<8x128xf32> to vector<1x8x128xf32>
    %c0_12 = arith.constant 0 : index
    %c0_13 = arith.constant 0 : index
    %c0_14 = arith.constant 0 : index
    %57 = vector.load %arg4[%c0_12, %c0_13, %c0_14] : memref<1x8x128xf32, #tpu.memory_space<vmem>>, vector<1x8x128xf32>
    tpu.vector_store %arg4[%c0_12, %c0_13, %c0_14], %56 {strides = array<i32>} : memref<1x8x128xf32, #tpu.memory_space<vmem>>, vector<1x8x128xf32>,
    return
  }
  func.func @transform_0(%arg0: i32) -> (i32, i32) {
    %c0_i32 = arith.constant 0 : i32
    %c0_i32_0 = arith.constant 0 : i32
    return %arg0, %c0_i32 : i32, i32
  }
  func.func @transform_1(%arg0: i32) -> (i32, i32) {
    %c0_i32 = arith.constant 0 : i32
    %c0_i32_0 = arith.constant 0 : i32
    return %arg0, %c0_i32 : i32, i32
  }
  func.func @transform_2(%arg0: i32) -> (i32, i32) {
    %c0_i32 = arith.constant 0 : i32
    %c0_i32_0 = arith.constant 0 : i32
    return %arg0, %c0_i32 : i32, i32
  }
  func.func @transform_3(%arg0: i32) -> (i32, i32, i32) {
    %c0_i32 = arith.constant 0 : i32
    %c0_i32_0 = arith.constant 0 : i32
    %c0_i32_1 = arith.constant 0 : i32
    return %arg0, %c0_i32, %c0_i32_0 : i32, i32, i32
  }
}

</mosaic_0001>

<bundles_post_ra>
// kernel: td_lowpass.1
= control target key start
LH: loop header
LB: loop body
LE: loop exit
PB: predicated region body
PF: predicated region fallthrough
CT: control target
= control target key end

     0   :  { %s393_s28 = smov 114   ;;  %s394_s10 = smov 127   ;;  %v43_v18 = vlaneseq  ;;  %s654_s0 = inlined_call_operand.vmem [shape: f32[16,384], index: 0, kind: input, shape index: {}]   ;;  %s655_s1 = inlined_call_operand.vmem [shape: f32[16,384], index: 1, kind: input, shape index: {}]   ;;  %s656_s2 = inlined_call_operand.vmem [shape: f32[16,256], index: 2, kind: output, shape index: {0}]   ;;  %s657_s3 = inlined_call_operand.vmem [shape: f32[1,8,128], index: 3, kind: output, shape index: {1}]  }
   0x1   :  { %v14_v0 = vld [vmem:[%s654_s0 + $0x8] sm:$0xff]  ;;  %v13_v2 = vld [vmem:[%s654_s0] sm:$0xff]  ;;  %v16_v8 = vld [vmem:[%s654_s0 + $0x18] sm:$0xff]  ;;  %s397_s11 = smov 116   ;;  %s398_s12 = smov 125  }
   0x2   :  { %v20_v1 = vld [vmem:[%s655_s1 + $0x8] sm:$0xff]  ;;  %v19_v4 = vld [vmem:[%s655_s1] sm:$0xff]  ;;  %v22_v9 = vld [vmem:[%s655_s1 + $0x18] sm:$0xff]  ;;  %s399_s13 = smov 117   ;;  %s400_s14 = smov 124   ;;  %v531_v19 = vand.u32 127, %v43_v18 }
   0x3   :  { %v436_v3 = vsub.f32 %v14_v0, %v20_v1  ;;  %v17_v5 = vld [vmem:[%s654_s0 + $0x20] sm:$0xff]  ;;  %v447_v7 = vsub.f32 %v13_v2, %v19_v4  ;;  %v459_v11 = vsub.f32 %v16_v8, %v22_v9  ;;  %v18_v12 = vld [vmem:[%s654_s0 + $0x28] sm:$0xff]  ;;  %v15_v14 = vld [vmem:[%s654_s0 + $0x10] sm:$0xff]  ;;  %s395_s0 = smov 115   ;;  %s401_s15 = smov 118  }
   0x4   :  { %v23_v6 = vld [vmem:[%s655_s1 + $0x20] sm:$0xff]  ;;  %v24_v13 = vld [vmem:[%s655_s1 + $0x28] sm:$0xff]  ;;  %v21_v15 = vld [vmem:[%s655_s1 + $0x10] sm:$0xff]  ;;  %s396_s1 = smov 126   ;;  %s402_s16 = smov 123   ;;  %vm45_vm0 = vcmp.lt.s32.totalorder %v531_v19, 114 }
   0x5   :  { %35 = vrot.lane.b32.xlu1 %v436_v3, %s393_s28  ;;  %v456_v10 = vsub.f32 %v17_v5, %v23_v6  ;;  %31 = vrot.lane.b32.xlu0 %v447_v7, %s393_s28  ;;  %v474_v16 = vsub.f32 %v18_v12, %v24_v13  ;;  %v477_v17 = vsub.f32 %v15_v14, %v21_v15  ;;  %s403_s17 = smov 119   ;;  %vm70_vm1 = vcmp.lt.s32.totalorder %v531_v19, 127  ;;  %s404_s18 = smov 122  }
   0x6   :  { %vm87_vm2 = vcmp.lt.s32.totalorder %v531_v19, 115  ;;  %s405_s19 = smov 120   ;;  %vm116_vm3 = vcmp.lt.s32.totalorder %v531_v19, 126  ;;  %s406_s20 = smov 121   ;;  %vm133_vm4 = vcmp.lt.s32.totalorder %v531_v19, 116  ;;  %vm162_vm5 = vcmp.lt.s32.totalorder %v531_v19, 125 }
   0x7   :  { %vm179_vm6 = vcmp.lt.s32.totalorder %v531_v19, 117  ;;  %vm208_vm7 = vcmp.lt.s32.totalorder %v531_v19, 124  ;;  %vm225_vm8 = vcmp.lt.s32.totalorder %v531_v19, 118  ;;  %vm271_vm9 = vcmp.lt.s32.totalorder %v531_v19, 119 }
   0x8   :  { %vm254_vm10 = vcmp.lt.s32.totalorder %v531_v19, 123  ;;  %vm317_vm11 = vcmp.lt.s32.totalorder %v531_v19, 120  ;;  %vm300_vm12 = vcmp.lt.s32.totalorder %v531_v19, 122  ;;  %vm346_vm13 = vcmp.lt.s32.totalorder %v531_v19, 121 }
   0x9   :  { %37 = vrot.lane.b32.xlu1 %v456_v10, %s393_s28  ;;  %33 = vrot.lane.b32.xlu0 %v459_v11, %s393_s28 }
   0xd   :  { %41 = vrot.lane.b32.xlu1 %v474_v16, %s393_s28  ;;  %39 = vrot.lane.b32.xlu0 %v477_v17, %s393_s28 }
  0x11   :  { %60 = vrot.lane.b32.xlu1 %v459_v11, %s394_s10  ;;  %58 = vrot.lane.b32.xlu0 %v447_v7, %s394_s10 }
  0x15   :  { %64 = vrot.lane.b32.xlu1 %v456_v10, %s394_s10  ;;  %62 = vrot.lane.b32.xlu0 %v436_v3, %s394_s10 }
  0x19   :  { %68 = vrot.lane.b32.xlu1 %v474_v16, %s394_s10  ;;  %66 = vrot.lane.b32.xlu0 %v477_v17, %s394_s10 }
  0x1d   :  { %77 = vrot.lane.b32.xlu1 %v459_v11, %s395_s0  ;;  %75 = vrot.lane.b32.xlu0 %v447_v7, %s395_s0 }
  0x21   :  { %81 = vrot.lane.b32.xlu1 %v456_v10, %s395_s0  ;;  %79 = vrot.lane.b32.xlu0 %v436_v3, %s395_s0 }
  0x25   :  { %85 = vrot.lane.b32.xlu1 %v474_v16, %s395_s0  ;;  %83 = vrot.lane.b32.xlu0 %v477_v17, %s395_s0 }
  0x29   :  { %106 = vrot.lane.b32.xlu1 %v459_v11, %s396_s1  ;;  %104 = vrot.lane.b32.xlu0 %v447_v7, %s396_s1 }
  0x2d   :  { %110 = vrot.lane.b32.xlu1 %v456_v10, %s396_s1  ;;  %108 = vrot.lane.b32.xlu0 %v436_v3, %s396_s1 }
  0x31   :  { %114 = vrot.lane.b32.xlu1 %v474_v16, %s396_s1  ;;  %112 = vrot.lane.b32.xlu0 %v477_v17, %s396_s1 }
  0x35   :  { %123 = vrot.lane.b32.xlu1 %v459_v11, %s397_s11  ;;  %121 = vrot.lane.b32.xlu0 %v447_v7, %s397_s11 }
  0x39   :  { %127 = vrot.lane.b32.xlu1 %v456_v10, %s397_s11  ;;  %125 = vrot.lane.b32.xlu0 %v436_v3, %s397_s11 }
  0x3d   :  { %131 = vrot.lane.b32.xlu1 %v474_v16, %s397_s11  ;;  %129 = vrot.lane.b32.xlu0 %v477_v17, %s397_s11 }
  0x41   :  { %152 = vrot.lane.b32.xlu1 %v459_v11, %s398_s12  ;;  %150 = vrot.lane.b32.xlu0 %v447_v7, %s398_s12 }
  0x45   :  { %156 = vrot.lane.b32.xlu1 %v456_v10, %s398_s12  ;;  %154 = vrot.lane.b32.xlu0 %v436_v3, %s398_s12 }
  0x49   :  { %160 = vrot.lane.b32.xlu1 %v474_v16, %s398_s12  ;;  %158 = vrot.lane.b32.xlu0 %v477_v17, %s398_s12 }
  0x4d   :  { %169 = vrot.lane.b32.xlu1 %v459_v11, %s399_s13  ;;  %167 = vrot.lane.b32.xlu0 %v447_v7, %s399_s13 }
  0x51   :  { %173 = vrot.lane.b32.xlu1 %v456_v10, %s399_s13  ;;  %171 = vrot.lane.b32.xlu0 %v436_v3, %s399_s13 }
  0x55   :  { %177 = vrot.lane.b32.xlu1 %v474_v16, %s399_s13  ;;  %175 = vrot.lane.b32.xlu0 %v477_v17, %s399_s13 }
  0x59   :  { %198 = vrot.lane.b32.xlu1 %v459_v11, %s400_s14  ;;  %196 = vrot.lane.b32.xlu0 %v447_v7, %s400_s14 }
  0x5d   :  { %202 = vrot.lane.b32.xlu1 %v456_v10, %s400_s14  ;;  %200 = vrot.lane.b32.xlu0 %v436_v3, %s400_s14 }
  0x61   :  { %206 = vrot.lane.b32.xlu1 %v474_v16, %s400_s14  ;;  %204 = vrot.lane.b32.xlu0 %v477_v17, %s400_s14 }
  0x65   :  { %215 = vrot.lane.b32.xlu1 %v459_v11, %s401_s15  ;;  %213 = vrot.lane.b32.xlu0 %v447_v7, %s401_s15 }
  0x69   :  { %219 = vrot.lane.b32.xlu1 %v456_v10, %s401_s15  ;;  %217 = vrot.lane.b32.xlu0 %v436_v3, %s401_s15 }
  0x6d   :  { %223 = vrot.lane.b32.xlu1 %v474_v16, %s401_s15  ;;  %221 = vrot.lane.b32.xlu0 %v477_v17, %s401_s15 }
  0x71   :  { %244 = vrot.lane.b32.xlu1 %v459_v11, %s402_s16  ;;  %242 = vrot.lane.b32.xlu0 %v447_v7, %s402_s16 }
  0x75   :  { %248 = vrot.lane.b32.xlu1 %v456_v10, %s402_s16  ;;  %246 = vrot.lane.b32.xlu0 %v436_v3, %s402_s16 }
  0x77   :  { %v36_v20 = vpop.permute.xlu1 %35  ;;  %v32_v21 = vpop.permute.xlu0 %31 }
  0x78   :  { %v48_v22 = vsel %vm45_vm0, %v32_v21, %v36_v20 }
  0x79   :  { %252 = vrot.lane.b32.xlu1 %v474_v16, %s402_s16  ;;  %250 = vrot.lane.b32.xlu0 %v477_v17, %s402_s16  ;;  %v50_v44 = vadd.f32 %v48_v22, %v447_v7 }
  0x7b   :  { %v38_v23 = vpop.permute.xlu1 %37  ;;  %v34_v24 = vpop.permute.xlu0 %33  ;;  %v54_v54 = vmul.f32 -0.0025775966, %v50_v44 }
  0x7c   :  { %v49_v25 = vsel %vm45_vm0, %v34_v24, %v38_v23 }
  0x7d   :  { %261 = vrot.lane.b32.xlu1 %v459_v11, %s403_s17  ;;  %259 = vrot.lane.b32.xlu0 %v447_v7, %s403_s17  ;;  %v52_v42 = vadd.f32 %v49_v25, %v459_v11 }
  0x7f   :  { %v42_v26 = vpop.permute.xlu1 %41  ;;  %v40_v28 = vpop.permute.xlu0 %39  ;;  %v56_v50 = vmul.f32 -0.0025775966, %v52_v42 }
  0x80   :  { %v47_v27 = vsel %vm45_vm0, %v38_v23, %v42_v26  ;;  %v46_v29 = vsel %vm45_vm0, %v36_v20, %v40_v28 }
  0x81   :  { %265 = vrot.lane.b32.xlu1 %v456_v10, %s403_s17  ;;  %263 = vrot.lane.b32.xlu0 %v436_v3, %s403_s17  ;;  %v53_v51 = vadd.f32 %v47_v27, %v456_v10  ;;  %v51_v55 = vadd.f32 %v46_v29, %v436_v3 }
  0x83   :  { %v61_v30 = vpop.permute.xlu1 %60  ;;  %v59_v31 = vpop.permute.xlu0 %58  ;;  %v57_v0 = vmul.f32 -0.0025775966, %v53_v51  ;;  %v55_v4 = vmul.f32 -0.0025775966, %v51_v55 }
  0x85   :  { %269 = vrot.lane.b32.xlu1 %v474_v16, %s403_s17  ;;  %267 = vrot.lane.b32.xlu0 %v477_v17, %s403_s17 }
  0x87   :  { %v65_v32 = vpop.permute.xlu1 %64  ;;  %v63_v34 = vpop.permute.xlu0 %62 }
  0x88   :  { %v74_v33 = vsel %vm70_vm1, %v61_v30, %v65_v32  ;;  %v73_v35 = vsel %vm70_vm1, %v59_v31, %v63_v34 }
  0x89   :  { %290 = vrot.lane.b32.xlu1 %v459_v11, %s404_s18  ;;  %288 = vrot.lane.b32.xlu0 %v447_v7, %s404_s18 }
  0x8b   :  { %v69_v36 = vpop.permute.xlu1 %68  ;;  %v67_v38 = vpop.permute.xlu0 %66 }
  0x8c   :  { %v72_v37 = vsel %vm70_vm1, %v65_v32, %v69_v36  ;;  %v71_v39 = vsel %vm70_vm1, %v63_v34, %v67_v38 }
  0x8d   :  { %294 = vrot.lane.b32.xlu1 %v456_v10, %s404_s18  ;;  %292 = vrot.lane.b32.xlu0 %v436_v3, %s404_s18 }
  0x8f   :  { %v78_v40 = vpop.permute.xlu1 %77  ;;  %v76_v41 = vpop.permute.xlu0 %75 }
  0x91   :  { %298 = vrot.lane.b32.xlu1 %v474_v16, %s404_s18  ;;  %296 = vrot.lane.b32.xlu0 %v477_v17, %s404_s18 }
  0x93   :  { %v82_v43 = vpop.permute.xlu1 %81  ;;  %v80_v46 = vpop.permute.xlu0 %79 }
  0x94   :  { %v91_v45 = vsel %vm87_vm2, %v78_v40, %v82_v43  ;;  %v90_v48 = vsel %vm87_vm2, %v76_v41, %v80_v46 }
  0x95   :  { %v94_v47 = vadd.f32 %v91_v45, %v74_v33  ;;  %307 = vrot.lane.b32.xlu1 %v459_v11, %s405_s19  ;;  %v92_v49 = vadd.f32 %v90_v48, %v73_v35  ;;  %305 = vrot.lane.b32.xlu0 %v447_v7, %s405_s19 }
  0x97   :  { %v98_v52 = vmul.f32 -0.006674495, %v94_v47  ;;  %v86_v53 = vpop.permute.xlu1 %85  ;;  %v96_v56 = vmul.f32 -0.006674495, %v92_v49  ;;  %v84_v58 = vpop.permute.xlu0 %83 }
  0x98   :  { %v89_v57 = vsel %vm87_vm2, %v82_v43, %v86_v53  ;;  %v88_v61 = vsel %vm87_vm2, %v80_v46, %v84_v58 }
  0x99   :  { %v102_v59 = vadd.f32 %v98_v52, %v56_v50  ;;  %v95_v60 = vadd.f32 %v89_v57, %v72_v37  ;;  %311 = vrot.lane.b32.xlu1 %v456_v10, %s405_s19  ;;  %v100_v62 = vadd.f32 %v96_v56, %v54_v54  ;;  %v93_v63 = vadd.f32 %v88_v61, %v71_v39 }
  0x9a   :  { %309 = vrot.lane.b32.xlu0 %v436_v3, %s405_s19 }
  0x9b   :  { %v99_v1 = vmul.f32 -0.006674495, %v95_v60  ;;  %v107_v2 = vpop.permute.xlu1 %106  ;;  %v97_v5 = vmul.f32 -0.006674495, %v93_v63  ;;  %v105_v6 = vpop.permute.xlu0 %104 }
  0x9d   :  { %v103_v8 = vadd.f32 %v99_v1, %v57_v0  ;;  %315 = vrot.lane.b32.xlu1 %v474_v16, %s405_s19  ;;  %v101_v9 = vadd.f32 %v97_v5, %v55_v4 }
  0x9e   :  { %313 = vrot.lane.b32.xlu0 %v477_v17, %s405_s19 }
  0x9f   :  { %v111_v12 = vpop.permute.xlu1 %110  ;;  %v109_v14 = vpop.permute.xlu0 %108 }
  0xa0   :  { %v120_v13 = vsel %vm116_vm3, %v107_v2, %v111_v12  ;;  %v119_v15 = vsel %vm116_vm3, %v105_v6, %v109_v14 }
  0xa1   :  { %336 = vrot.lane.b32.xlu1 %v459_v11, %s406_s20 }
  0xa2   :  { %334 = vrot.lane.b32.xlu0 %v447_v7, %s406_s20 }
  0xa3   :  { %v115_v18 = vpop.permute.xlu1 %114  ;;  %v113_v21 = vpop.permute.xlu0 %112 }
  0xa4   :  { %v118_v20 = vsel %vm116_vm3, %v111_v12, %v115_v18  ;;  %v117_v22 = vsel %vm116_vm3, %v109_v14, %v113_v21 }
  0xa5   :  { %340 = vrot.lane.b32.xlu1 %v456_v10, %s406_s20 }
  0xa6   :  { %338 = vrot.lane.b32.xlu0 %v436_v3, %s406_s20 }
  0xa7   :  { %v124_v23 = vpop.permute.xlu1 %123  ;;  %v122_v24 = vpop.permute.xlu0 %121 }
  0xa9   :  { %344 = vrot.lane.b32.xlu1 %v474_v16, %s406_s20 }
  0xaa   :  { %342 = vrot.lane.b32.xlu0 %v477_v17, %s406_s20 }
  0xab   :  { %v128_v25 = vpop.permute.xlu1 %127  ;;  %v126_v26 = vpop.permute.xlu0 %125 }
  0xac   :  { %v137_v11 = vsel %vm133_vm4, %v124_v23, %v128_v25  ;;  %v136_v27 = vsel %vm133_vm4, %v122_v24, %v126_v26 }
  0xad   :  { %v140_v7 = vadd.f32 %v137_v11, %v120_v13  ;;  %v138_v28 = vadd.f32 %v136_v27, %v119_v15 }
  0xaf   :  { %v144_v29 = vmul.f32 -0.011421091, %v140_v7  ;;  %v132_v30 = vpop.permute.xlu1 %131  ;;  %v142_v31 = vmul.f32 -0.011421091, %v138_v28  ;;  %v130_v32 = vpop.permute.xlu0 %129 }
  0xb0   :  { %v135_v10 = vsel %vm133_vm4, %v128_v25, %v132_v30  ;;  %v134_v34 = vsel %vm133_vm4, %v126_v26, %v130_v32 }
  0xb1   :  { %v148_v3 = vadd.f32 %v144_v29, %v102_v59  ;;  %v141_v33 = vadd.f32 %v135_v10, %v118_v20  ;;  %v146_v35 = vadd.f32 %v142_v31, %v100_v62  ;;  %v139_v16 = vadd.f32 %v134_v34, %v117_v22 }
  0xb3   :  { %v145_v36 = vmul.f32 -0.011421091, %v141_v33  ;;  %v153_v37 = vpop.permute.xlu1 %152  ;;  %v143_v38 = vmul.f32 -0.011421091, %v139_v16  ;;  %v151_v17 = vpop.permute.xlu0 %150 }
  0xb5   :  { %v149_v39 = vadd.f32 %v145_v36, %v103_v8  ;;  %v147_v40 = vadd.f32 %v143_v38, %v101_v9 }
  0xb7   :  { %v157_v41 = vpop.permute.xlu1 %156  ;;  %v155_v43 = vpop.permute.xlu0 %154 }
  0xb8   :  { %v166_v42 = vsel %vm162_vm5, %v153_v37, %v157_v41  ;;  %v165_v44 = vsel %vm162_vm5, %v151_v17, %v155_v43 }
  0xbb   :  { %v161_v45 = vpop.permute.xlu1 %160  ;;  %v159_v47 = vpop.permute.xlu0 %158 }
  0xbc   :  { %v164_v46 = vsel %vm162_vm5, %v157_v41, %v161_v45  ;;  %v163_v48 = vsel %vm162_vm5, %v155_v43, %v159_v47 }
  0xbf   :  { %v170_v49 = vpop.permute.xlu1 %169  ;;  %v168_v50 = vpop.permute.xlu0 %167 }
  0xc3   :  { %v174_v51 = vpop.permute.xlu1 %173  ;;  %v172_v53 = vpop.permute.xlu0 %171 }
  0xc4   :  { %v183_v52 = vsel %vm179_vm6, %v170_v49, %v174_v51  ;;  %v182_v55 = vsel %vm179_vm6, %v168_v50, %v172_v53 }
  0xc5   :  { %v186_v54 = vadd.f32 %v183_v52, %v166_v42  ;;  %v184_v56 = vadd.f32 %v182_v55, %v165_v44 }
  0xc7   :  { %v190_v57 = vmul.f32 4.2737217e-18, %v186_v54  ;;  %v178_v58 = vpop.permute.xlu1 %177  ;;  %v188_v59 = vmul.f32 4.2737217e-18, %v184_v56  ;;  %v176_v61 = vpop.permute.xlu0 %175 }
  0xc8   :  { %v181_v60 = vsel %vm179_vm6, %v174_v51, %v178_v58  ;;  %v180_v0 = vsel %vm179_vm6, %v172_v53, %v176_v61 }
  0xc9   :  { %v194_v62 = vadd.f32 %v190_v57, %v148_v3  ;;  %v187_v63 = vadd.f32 %v181_v60, %v164_v46  ;;  %v192_v1 = vadd.f32 %v188_v59, %v146_v35  ;;  %v185_v2 = vadd.f32 %v180_v0, %v163_v48 }
  0xcb   :  { %v191_v4 = vmul.f32 4.2737217e-18, %v187_v63  ;;  %v199_v5 = vpop.permute.xlu1 %198  ;;  %v189_v6 = vmul.f32 4.2737217e-18, %v185_v2  ;;  %v197_v8 = vpop.permute.xlu0 %196 }
  0xcd   :  { %v195_v9 = vadd.f32 %v191_v4, %v149_v39  ;;  %v193_v12 = vadd.f32 %v189_v6, %v147_v40 }
  0xcf   :  { %v203_v13 = vpop.permute.xlu1 %202  ;;  %v201_v15 = vpop.permute.xlu0 %200 }
  0xd0   :  { %v212_v14 = vsel %vm208_vm7, %v199_v5, %v203_v13  ;;  %v211_v18 = vsel %vm208_vm7, %v197_v8, %v201_v15 }
  0xd3   :  { %v207_v20 = vpop.permute.xlu1 %206  ;;  %v205_v22 = vpop.permute.xlu0 %204 }
  0xd4   :  { %v210_v21 = vsel %vm208_vm7, %v203_v13, %v207_v20  ;;  %v209_v23 = vsel %vm208_vm7, %v201_v15, %v205_v22 }
  0xd7   :  { %v216_v24 = vpop.permute.xlu1 %215  ;;  %v214_v25 = vpop.permute.xlu0 %213 }
  0xdb   :  { %v220_v11 = vpop.permute.xlu1 %219  ;;  %v218_v7 = vpop.permute.xlu0 %217 }
  0xdc   :  { %v229_v26 = vsel %vm225_vm8, %v216_v24, %v220_v11  ;;  %v228_v28 = vsel %vm225_vm8, %v214_v25, %v218_v7 }
  0xdd   :  { %v232_v27 = vadd.f32 %v229_v26, %v212_v14  ;;  %v230_v29 = vadd.f32 %v228_v28, %v211_v18 }
  0xdf   :  { %v236_v30 = vmul.f32 0.048292533, %v232_v27  ;;  %v224_v31 = vpop.permute.xlu1 %223  ;;  %v234_v10 = vmul.f32 0.048292533, %v230_v29  ;;  %v222_v3 = vpop.permute.xlu0 %221 }
  0xe0   :  { %v227_v32 = vsel %vm225_vm8, %v220_v11, %v224_v31  ;;  %v226_v35 = vsel %vm225_vm8, %v218_v7, %v222_v3 }
  0xe1   :  { %v582_v33 = vadd.f32 %v236_v30, %v194_v62  ;;  %v233_v34 = vadd.f32 %v227_v32, %v210_v21  ;;  %v584_v16 = vadd.f32 %v234_v10, %v192_v1  ;;  %v231_v36 = vadd.f32 %v226_v35, %v209_v23 }
  0xe3   :  { %v237_v37 = vmul.f32 0.048292533, %v233_v34  ;;  %v245_v38 = vpop.permute.xlu1 %244  ;;  %v235_v17 = vmul.f32 0.048292533, %v231_v36  ;;  %v243_v39 = vpop.permute.xlu0 %242 }
  0xe5   :  { %v586_v40 = vadd.f32 %v237_v37, %v195_v9  ;;  %v588_v41 = vadd.f32 %v235_v17, %v193_v12 }
  0xe7   :  { %v249_v42 = vpop.permute.xlu1 %248  ;;  %v247_v43 = vpop.permute.xlu0 %246 }
  0xe8   :  { %v258_v0 = vsel %vm254_vm10, %v245_v38, %v249_v42  ;;  %v257_v2 = vsel %vm254_vm10, %v243_v39, %v247_v43 }
  0xeb   :  { %v253_v44 = vpop.permute.xlu1 %252  ;;  %v251_v45 = vpop.permute.xlu0 %250 }
  0xec   :  { %v256_v20 = vsel %vm254_vm10, %v249_v42, %v253_v44  ;;  %v255_v23 = vsel %vm254_vm10, %v247_v43, %v251_v45 }
  0xef   :  { %v262_v46 = vpop.permute.xlu1 %261  ;;  %v260_v47 = vpop.permute.xlu0 %259 }
  0xf3   :  { %v266_v48 = vpop.permute.xlu1 %265  ;;  %v264_v49 = vpop.permute.xlu0 %263 }
  0xf4   :  { %v275_v61 = vsel %vm271_vm9, %v262_v46, %v266_v48  ;;  %v274_v63 = vsel %vm271_vm9, %v260_v47, %v264_v49 }
  0xf5   :  { %v278_v4 = vadd.f32 %v275_v61, %v258_v0  ;;  %v276_v8 = vadd.f32 %v274_v63, %v257_v2 }
  0xf7   :  { %v270_v50 = vpop.permute.xlu1 %269  ;;  %v268_v51 = vpop.permute.xlu0 %267  ;;  %v282_v24 = vmul.f32 0.13185945, %v278_v4  ;;  %v280_v7 = vmul.f32 0.13185945, %v276_v8 }
  0xf8   :  { %v273_v9 = vsel %vm271_vm9, %v266_v48, %v270_v50  ;;  %v272_v14 = vsel %vm271_vm9, %v264_v49, %v268_v51 }
  0xf9   :  { %v279_v25 = vadd.f32 %v273_v9, %v256_v20  ;;  %v277_v27 = vadd.f32 %v272_v14, %v255_v23  ;;  %v286_v34 = vadd.f32 %v282_v24, %v582_v33  ;;  %v284_v37 = vadd.f32 %v280_v7, %v584_v16 }
  0xfb   :  { %v291_v52 = vpop.permute.xlu1 %290  ;;  %v289_v53 = vpop.permute.xlu0 %288  ;;  %v283_v35 = vmul.f32 0.13185945, %v279_v25  ;;  %v281_v38 = vmul.f32 0.13185945, %v277_v27 }
  0xfd   :  { %v287_v33 = vadd.f32 %v283_v35, %v586_v40  ;;  %v285_v16 = vadd.f32 %v281_v38, %v588_v41 }
  0xff   :  { %v295_v54 = vpop.permute.xlu1 %294  ;;  %v293_v55 = vpop.permute.xlu0 %292 }
 0x100   :  { %v304_v12 = vsel %vm300_vm12, %v291_v52, %v295_v54  ;;  %v303_v15 = vsel %vm300_vm12, %v289_v53, %v293_v55 }
 0x103   :  { %v299_v56 = vpop.permute.xlu1 %298  ;;  %v297_v57 = vpop.permute.xlu0 %296 }
 0x104   :  { %v302_v28 = vsel %vm300_vm12, %v295_v54, %v299_v56  ;;  %v301_v30 = vsel %vm300_vm12, %v293_v55, %v297_v57 }
 0x107   :  { %v308_v58 = vpop.permute.xlu1 %307  ;;  %v306_v59 = vpop.permute.xlu0 %305 }
 0x10b   :  { %v312_v60 = vpop.permute.xlu1 %311 }
 0x10c   :  { %v310_v62 = vpop.permute.xlu0 %309  ;;  %v321_v1 = vsel %vm317_vm11, %v308_v58, %v312_v60 }
 0x10d   :  { %v320_v5 = vsel %vm317_vm11, %v306_v59, %v310_v62  ;;  %v324_v18 = vadd.f32 %v321_v1, %v304_v12 }
 0x10e   :  { %v322_v21 = vadd.f32 %v320_v5, %v303_v15 }
 0x10f   :  { %v316_v6 = vpop.permute.xlu1 %315  ;;  %v328_v31 = vmul.f32 0.2152654, %v324_v18 }
 0x110   :  { %v314_v13 = vpop.permute.xlu0 %313  ;;  %v319_v22 = vsel %vm317_vm11, %v312_v60, %v316_v6  ;;  %v326_v32 = vmul.f32 0.2152654, %v322_v21 }
 0x111   :  { %v318_v11 = vsel %vm317_vm11, %v310_v62, %v314_v13  ;;  %v325_v10 = vadd.f32 %v319_v22, %v302_v28  ;;  %v332_v42 = vadd.f32 %v328_v31, %v286_v34 }
 0x112   :  { %v323_v3 = vadd.f32 %v318_v11, %v301_v30  ;;  %v330_v46 = vadd.f32 %v326_v32, %v284_v37 }
 0x113   :  { %v337_v26 = vpop.permute.xlu1 %336  ;;  %v329_v43 = vmul.f32 0.2152654, %v325_v10 }
 0x114   :  { %v335_v29 = vpop.permute.xlu0 %334  ;;  %v327_v47 = vmul.f32 0.2152654, %v323_v3 }
 0x115   :  { %v333_v54 = vadd.f32 %v329_v43, %v287_v33 }
 0x116   :  { %v331_v57 = vadd.f32 %v327_v47, %v285_v16 }
 0x117   :  { %v341_v36 = vpop.permute.xlu1 %340 }
 0x118   :  { %v350_v17 = vsel %vm346_vm13, %v337_v26, %v341_v36  ;;  %v339_v39 = vpop.permute.xlu0 %338 }
 0x119   :  { %v353_v44 = vmul.f32 0.25051162, %v350_v17  ;;  %v349_v45 = vsel %vm346_vm13, %v335_v29, %v339_v39 }
 0x11a   :  { %v351_v48 = vmul.f32 0.25051162, %v349_v45 }
 0x11b   :  { %v357_v49 = vadd.f32 %v353_v44, %v332_v42  ;;  %v345_v50 = vpop.permute.xlu1 %344 }
 0x11c   :  { %v355_v51 = vadd.f32 %v351_v48, %v330_v46  ;;  %v348_v52 = vsel %vm346_vm13, %v341_v36, %v345_v50  ;;  %v343_v53 = vpop.permute.xlu0 %342 }
 0x11d   :  { %361 = vst [vmem:[%s656_s2 + $0x10] sm:$0xff] %v357_v49  ;;  %v354_v55 = vmul.f32 0.25051162, %v348_v52  ;;  %v347_v56 = vsel %vm346_vm13, %v339_v39, %v343_v53  ;;  %v365_v59 = vmul.f32 %v357_v49, %v357_v49 }
 0x11e   :  { %359 = vst [vmem:[%s656_s2] sm:$0xff] %v355_v51  ;;  %v352_v40 = vmul.f32 0.25051162, %v347_v56  ;;  %v363_v61 = vmul.f32 %v355_v51, %v355_v51 }
 0x11f   :  { %v358_v41 = vadd.f32 %v354_v55, %v333_v54 }
 0x120   :  { %v356_v58 = vadd.f32 %v352_v40, %v331_v57 }
 0x121   :  { %362 = vst [vmem:[%s656_s2 + $0x18] sm:$0xff] %v358_v41  ;;  %v366_v60 = vmul.f32 %v358_v41, %v358_v41 }
 0x122   :  { %360 = vst [vmem:[%s656_s2 + $0x8] sm:$0xff] %v356_v58  ;;  %v364_v19 = vmul.f32 %v356_v58, %v356_v58 }
 0x123   :  { %v368_v62 = vadd.f32 %v366_v60, %v365_v59 }
 0x124   :  { %v367_v63 = vadd.f32 %v364_v19, %v363_v61 }
 0x126   :  { %v369_v0 = vadd.f32 %v368_v62, %v367_v63 }
 0x128   :  { %370 = vst [vmem:[%s657_s3] sm:$0xff] %v369_v0 }

</bundles_post_ra>
